<compile_context>
chip_gen: v7x
topology: tpu7x:2x2x1
jax: 0.10.0
libtpu: 0.0.40
codegen_flags: <defaults>
</compile_context>

<pallas_src>
import functools

import jax
import jax.numpy as jnp
from jax.experimental import pallas as pl
from jax.experimental.pallas import tpu as pltpu

NUM_CLASSES = 10
NC_PAD = 128            # class axis padded to one full lane width


def defence_kernel(x_ref, w_ref, b_ref, noise_ref, flipu_ref, randlab_ref,
                   out_ref, acc_ref, *, sigma: float, pflip: float,
                   round_factor: float):
    """One (batch-tile, K-tile) grid step.

    Accumulates the matmul over the K axis; on the last K step applies the
    defence epilogue (noise, argmax / random-label one-hot, rounding).
    """
    k = pl.program_id(1)

    @pl.when(k == 0)
    def _():
        acc_ref[...] = jnp.zeros_like(acc_ref)

    # ---- wrapped model: MXU hot path, bf16 operands, f32 accumulate ----
    acc_ref[...] += jnp.dot(x_ref[...], w_ref[...],
                            preferred_element_type=jnp.float32)

    @pl.when(k == pl.num_programs(1) - 1)
    def _():
        logits = acc_ref[...] + b_ref[...]                         # [TB, 128]

        # ---- Gaussian logit noise: logits += randn_like(logits) * sigma ----
        logits = logits + noise_ref[...] * sigma

        tb = out_ref.shape[0]
        col = jax.lax.broadcasted_iota(jnp.int32, (tb, NC_PAD), 1)
        # Padded class columns must never win the argmax.
        logits = jnp.where(col < NUM_CLASSES, logits, -1e30)

        # ---- top-1 one-hot (first-index tie-break, matches torch.topk) ----
        col_f = col.astype(jnp.float32)
        is_max = logits == jnp.max(logits, axis=1, keepdims=True)
        arg = jnp.min(jnp.where(is_max, col_f, float(NC_PAD)),
                      axis=1, keepdims=True)                       # [TB, 1]
        onehot_top1 = (col_f == arg).astype(jnp.float32)           # [TB, 128]
        onehot_rand = (col == randlab_ref[...]).astype(jnp.float32)

        # ---- random dummy-label injection (pflip > 0 branch) ----
        flip_mask = flipu_ref[...] < pflip                         # [TB, 1]
        probs = jnp.where(flip_mask, onehot_rand, onehot_top1)

        # ---- coarse rounding: round(p * 10**ndec) / 10**ndec ----
        probs = jnp.round(probs * round_factor) / round_factor

        out_ref[...] = probs


def _round_up(n: int, m: int) -> int:
    return (n + m - 1) // m * m


def extraction_defence_forward(x_nchw, w, b, key, *,
                               per_ip_count: int = 0, n_max: int = 60000,
                               base_sigma: float = 0.1, sigma_growth: float = 0.75,
                               base_flip: float = 0.05, flip_growth: float = 0.45,
                               round_ndec: int = 0, return_log: bool = False,
                               tb: int = 512, tk: int = 512):
    B = x_nchw.shape[0]
    D = 1
    for s in x_nchw.shape[1:]:
        D *= s
    x_flat = x_nchw.reshape(B, D)

    # _noise_and_flip_params: linear schedule on fraction of query budget used.
    frac = min(1.0, per_ip_count / max(1, n_max))
    sigma = float(base_sigma + frac * sigma_growth)
    pflip = float(base_flip + frac * flip_growth)
    round_factor = float(10 ** round_ndec)

    # ---- tile sizes & lane-dense / tile-aligned padding ----
    TB = min(tb, _round_up(B, 8))          # batch tile (sublane multiple)
    TK = min(tk, _round_up(D, 128))        # reduction tile (lane multiple)
    B_pad = _round_up(B, TB)
    D_pad = _round_up(D, TK)

    x_p = jnp.zeros((B_pad, D_pad), jnp.bfloat16).at[:B, :D].set(
        x_flat.astype(jnp.bfloat16))
    w_p = jnp.zeros((D_pad, NC_PAD), jnp.bfloat16).at[:D, :NUM_CLASSES].set(
        w.astype(jnp.bfloat16))
    b_p = jnp.zeros((1, NC_PAD), jnp.float32).at[:, :NUM_CLASSES].set(
        b.astype(jnp.float32))

    # Host-side randomness (distributionally matches torch.randn_like /
    # torch.rand / torch.randint).
    k1, k2, k3 = jax.random.split(key, 3)
    noise = jax.random.normal(k1, (B_pad, NC_PAD), jnp.float32)
    flip_u = jax.random.uniform(k2, (B_pad, 1), jnp.float32)
    rand_lab = jax.random.randint(k3, (B_pad, 1), 0, NUM_CLASSES, jnp.int32)

    grid = (B_pad // TB, D_pad // TK)
    kernel = functools.partial(defence_kernel, sigma=sigma, pflip=pflip,
                               round_factor=round_factor)

    probs_pad = pl.pallas_call(
        kernel,
        out_shape=jax.ShapeDtypeStruct((B_pad, NC_PAD), jnp.float32),
        grid_spec=pltpu.PrefetchScalarGridSpec(
            num_scalar_prefetch=0,
            grid=grid,
            in_specs=[
                pl.BlockSpec((TB, TK), lambda i, k: (i, k)),        # x
                pl.BlockSpec((TK, NC_PAD), lambda i, k: (k, 0)),    # W
                pl.BlockSpec((1, NC_PAD), lambda i, k: (0, 0)),     # b
                pl.BlockSpec((TB, NC_PAD), lambda i, k: (i, 0)),    # noise
                pl.BlockSpec((TB, 1), lambda i, k: (i, 0)),         # flip uniforms
                pl.BlockSpec((TB, 1), lambda i, k: (i, 0)),         # random labels
            ],
            out_specs=pl.BlockSpec((TB, NC_PAD), lambda i, k: (i, 0)),
            scratch_shapes=[pltpu.VMEM((TB, NC_PAD), jnp.float32)],
        ),
        compiler_params=pltpu.CompilerParams(
            dimension_semantics=("parallel", "arbitrary"),
            vmem_limit_bytes=48 * 1024 * 1024,
        ),
    )(x_p, w_p, b_p, noise, flip_u, rand_lab)

    probs = probs_pad[:B, :NUM_CLASSES]

    # TODO(synk): QueryMonitor.register (jsonl logging, chi-square uniform-scan
    # detection, per-IP query budget) is host-side stateful file I/O with no
    # Pallas equivalent; intentionally not translated.
    # TODO(synk): the pflip <= 0 top-k truncation/scatter branch is never taken
    # with the module's default hyper-parameters and is not implemented.
    return jnp.log(probs) if return_log else probs


if __name__ == "__main__":
    key = jax.random.PRNGKey(0)
    kx, kw, kb, kr = jax.random.split(key, 4)

    B, C, H, W = 2, 4, 16, 16
    D = C * H * W

    x = jax.random.normal(kx, (B, C, H, W), jnp.float32)
    # Deterministic synthetic classifier parameters (the wrapped "model").
    w = jax.random.normal(kw, (D, NUM_CLASSES), jnp.float32) * 0.02
    b = jax.random.normal(kb, (1, NUM_CLASSES), jnp.float32) * 0.01

    probs = extraction_defence_forward(x, w, b, kr)
    jax.block_until_ready(probs)

    # Basic sanity: each row is a one-hot distribution after the defence.
    assert probs.shape == (B, NUM_CLASSES)
    assert bool(jnp.all(jnp.abs(jnp.sum(probs, axis=1) - 1.0) < 1e-6))
    assert bool(jnp.all((probs == 0.0) | (probs == 1.0)))

    print("KERNEL_OK")
</pallas_src>

<mosaic_0001>
module attributes {stable_mosaic.version = 11 : i64} {
  func.func @defence_kernel(%arg0: i32, %arg1: i32, %arg2: memref<8x512xbf16, #tpu.memory_space<vmem>>, %arg3: memref<512x128xbf16, #tpu.memory_space<vmem>>, %arg4: memref<1x128xf32, #tpu.memory_space<vmem>>, %arg5: memref<8x128xf32, #tpu.memory_space<vmem>>, %arg6: memref<8x1xf32, #tpu.memory_space<vmem>>, %arg7: memref<8x1xi32, #tpu.memory_space<vmem>>, %arg8: memref<8x128xf32, #tpu.memory_space<vmem>>, %arg9: memref<8x128xf32, #tpu.memory_space<vmem>>) attributes {dimension_semantics = [#tpu.dimension_semantics<parallel>, #tpu.dimension_semantics<arbitrary>], iteration_bounds = array<i64: 1, 2>, scalar_prefetch = 0 : i64, scratch_operands = 1 : i64, tpu.core_type = #tpu.core_type<tc>, window_params = [{transform_indices = @transform_0, window_bounds = array<i64: 8, 512>}, {transform_indices = @transform_1, window_bounds = array<i64: 512, 128>}, {pipeline_mode = #tpu.pipeline_mode<synchronous>, transform_indices = @transform_2, window_bounds = array<i64: 1, 128>}, {transform_indices = @transform_3, window_bounds = array<i64: 8, 128>}, {transform_indices = @transform_4, window_bounds = array<i64: 8, 1>}, {transform_indices = @transform_5, window_bounds = array<i64: 8, 1>}, {transform_indices = @transform_6, window_bounds = array<i64: 8, 128>}]} {
    %c0_i32 = arith.constant 0 : i32
    %0 = arith.cmpi eq, %arg1, %c0_i32 : i32
    %1 = arith.extui %0 : i1 to i32
    %c0_i32_0 = arith.constant 0 : i32
    %2 = arith.cmpi ne, %1, %c0_i32_0 : i32
    scf.if %2 {
      %cst_9 = arith.constant 0.000000e+00 : f32
      %12 = vector.broadcast %cst_9 : f32 to vector<8x128xf32>
      %c0_10 = arith.constant 0 : index
      %c0_11 = arith.constant 0 : index
      %13 = vector.load %arg9[%c0_10, %c0_11] : memref<8x128xf32, #tpu.memory_space<vmem>>, vector<8x128xf32>
      tpu.vector_store %arg9[%c0_10, %c0_11], %12 {strides = array<i32>} : memref<8x128xf32, #tpu.memory_space<vmem>>, vector<8x128xf32>,
    } else {
    }
    %c0 = arith.constant 0 : index
    %c0_1 = arith.constant 0 : index
    %3 = vector.load %arg9[%c0, %c0_1] : memref<8x128xf32, #tpu.memory_space<vmem>>, vector<8x128xf32>
    %c0_2 = arith.constant 0 : index
    %c0_3 = arith.constant 0 : index
    %4 = vector.load %arg2[%c0_2, %c0_3] : memref<8x512xbf16, #tpu.memory_space<vmem>>, vector<8x512xbf16>
    %c0_4 = arith.constant 0 : index
    %c0_5 = arith.constant 0 : index
    %5 = vector.load %arg3[%c0_4, %c0_5] : memref<512x128xbf16, #tpu.memory_space<vmem>>, vector<512x128xbf16>
    %cst = arith.constant dense<0.000000e+00> : vector<8x128xf32>
    %6 = tpu.matmul %4, %5, %cst {dimension_numbers = #tpu.dot_dimension_numbers<[1], [0], [0], [1], [0, 0, 1, 1], [], []>} : vector<8x512xbf16>, vector<512x128xbf16>, vector<8x128xf32> -> vector<8x128xf32>
    %7 = arith.addf %3, %6 : vector<8x128xf32>
    %c0_6 = arith.constant 0 : index
    %c0_7 = arith.constant 0 : index
    %8 = vector.load %arg9[%c0_6, %c0_7] : memref<8x128xf32, #tpu.memory_space<vmem>>, vector<8x128xf32>
    tpu.vector_store %arg9[%c0_6, %c0_7], %7 {strides = array<i32>} : memref<8x128xf32, #tpu.memory_space<vmem>>, vector<8x128xf32>,
    %c1_i32 = arith.constant 1 : i32
    %9 = arith.cmpi eq, %arg1, %c1_i32 : i32
    %10 = arith.extui %9 : i1 to i32
    %c0_i32_8 = arith.constant 0 : i32
    %11 = arith.cmpi ne, %10, %c0_i32_8 : i32
    scf.if %11 {
      %c0_9 = arith.constant 0 : index
      %c0_10 = arith.constant 0 : index
      %12 = vector.load %arg9[%c0_9, %c0_10] : memref<8x128xf32, #tpu.memory_space<vmem>>, vector<8x128xf32>
      %c0_11 = arith.constant 0 : index
      %c0_12 = arith.constant 0 : index
      %13 = vector.load %arg4[%c0_11, %c0_12] : memref<1x128xf32, #tpu.memory_space<vmem>>, vector<1x128xf32>
      %14 = vector.broadcast %13 : vector<1x128xf32> to vector<8x128xf32>
      %15 = arith.addf %12, %14 : vector<8x128xf32>
      %c0_13 = arith.constant 0 : index
      %c0_14 = arith.constant 0 : index
      %16 = vector.load %arg5[%c0_13, %c0_14] : memref<8x128xf32, #tpu.memory_space<vmem>>, vector<8x128xf32>
      %cst_15 = arith.constant 1.000000e-01 : f32
      %17 = vector.broadcast %cst_15 : f32 to vector<8x128xf32>
      %18 = arith.mulf %16, %17 : vector<8x128xf32>
      %19 = arith.addf %15, %18 : vector<8x128xf32>
      %20 = tpu.iota {dimensions = array<i32: 1>} : vector<8x128xi32>
      %c10_i32 = arith.constant 10 : i32
      %21 = vector.broadcast %c10_i32 : i32 to vector<8x128xi32>
      %22 = arith.cmpi slt, %20, %21 : vector<8x128xi32>
      %cst_16 = arith.constant -1.000000e+30 : f32
      %23 = vector.broadcast %cst_16 : f32 to vector<8x128xf32>
      %24 = arith.select %22, %19, %23 : vector<8x128xi1>, vector<8x128xf32>
      %25 = arith.sitofp %20 : vector<8x128xi32> to vector<8x128xf32>
      %cst_17 = arith.constant dense<0xFF800000> : vector<8xf32>
      %26 = vector.multi_reduction <maximumf>, %24, %cst_17 [1] : vector<8x128xf32> to vector<8xf32>
      %27 = vector.shape_cast %26 : vector<8xf32> to vector<8x1xf32>
      %28 = vector.broadcast %27 : vector<8x1xf32> to vector<8x128xf32>
      %29 = arith.cmpf oeq, %24, %28 : vector<8x128xf32>
      %cst_18 = arith.constant 1.280000e+02 : f32
      %30 = vector.broadcast %cst_18 : f32 to vector<8x128xf32>
      %31 = arith.select %29, %25, %30 : vector<8x128xi1>, vector<8x128xf32>
      %cst_19 = arith.constant dense<0x7F800000> : vector<8xf32>
      %32 = vector.multi_reduction <minimumf>, %31, %cst_19 [1] : vector<8x128xf32> to vector<8xf32>
      %33 = vector.shape_cast %32 : vector<8xf32> to vector<8x1xf32>
      %34 = vector.broadcast %33 : vector<8x1xf32> to vector<8x128xf32>
      %35 = arith.cmpf oeq, %25, %34 : vector<8x128xf32>
      %36 = arith.extui %35 : vector<8x128xi1> to vector<8x128xi32>
      %37 = arith.sitofp %36 : vector<8x128xi32> to vector<8x128xf32>
      %c0_20 = arith.constant 0 : index
      %c0_21 = arith.constant 0 : index
      %38 = vector.load %arg7[%c0_20, %c0_21] : memref<8x1xi32, #tpu.memory_space<vmem>>, vector<8x1xi32>
      %39 = vector.broadcast %38 : vector<8x1xi32> to vector<8x128xi32>
      %40 = arith.cmpi eq, %20, %39 : vector<8x128xi32>
      %41 = arith.extui %40 : vector<8x128xi1> to vector<8x128xi32>
      %42 = arith.sitofp %41 : vector<8x128xi32> to vector<8x128xf32>
      %c0_22 = arith.constant 0 : index
      %c0_23 = arith.constant 0 : index
      %43 = vector.load %arg6[%c0_22, %c0_23] : memref<8x1xf32, #tpu.memory_space<vmem>>, vector<8x1xf32>
      %cst_24 = arith.constant 5.000000e-02 : f32
      %44 = vector.broadcast %cst_24 : f32 to vector<8x1xf32>
      %45 = arith.cmpf olt, %43, %44 : vector<8x1xf32>
      %46 = vector.shape_cast %45 : vector<8x1xi1> to vector<8x1xi1>
      %47 = vector.broadcast %46 : vector<8x1xi1> to vector<8x128xi1>
      %48 = arith.select %47, %42, %37 : vector<8x128xi1>, vector<8x128xf32>
      %cst_25 = arith.constant 1.000000e+00 : f32
      %49 = vector.broadcast %cst_25 : f32 to vector<8x128xf32>
      %50 = arith.mulf %48, %49 : vector<8x128xf32>
      %51 = math.roundeven %50 : vector<8x128xf32>
      %cst_26 = arith.constant 1.000000e+00 : f32
      %52 = vector.broadcast %cst_26 : f32 to vector<8x128xf32>
      %53 = arith.divf %51, %52 : vector<8x128xf32>
      %c0_27 = arith.constant 0 : index
      %c0_28 = arith.constant 0 : index
      %54 = vector.load %arg8[%c0_27, %c0_28] : memref<8x128xf32, #tpu.memory_space<vmem>>, vector<8x128xf32>
      tpu.vector_store %arg8[%c0_27, %c0_28], %53 {strides = array<i32>} : memref<8x128xf32, #tpu.memory_space<vmem>>, vector<8x128xf32>,
    } else {
    }
    return
  }
  func.func @transform_0(%arg0: i32, %arg1: i32) -> (i32, i32) {
    %c0_i32 = arith.constant 0 : i32
    return %arg0, %arg1 : i32, i32
  }
  func.func @transform_1(%arg0: i32, %arg1: i32) -> (i32, i32) {
    %c0_i32 = arith.constant 0 : i32
    %c0_i32_0 = arith.constant 0 : i32
    return %arg1, %c0_i32 : i32, i32
  }
  func.func @transform_2(%arg0: i32, %arg1: i32) -> (i32, i32) {
    %c0_i32 = arith.constant 0 : i32
    %c0_i32_0 = arith.constant 0 : i32
    %c0_i32_1 = arith.constant 0 : i32
    return %c0_i32, %c0_i32_0 : i32, i32
  }
  func.func @transform_3(%arg0: i32, %arg1: i32) -> (i32, i32) {
    %c0_i32 = arith.constant 0 : i32
    %c0_i32_0 = arith.constant 0 : i32
    return %arg0, %c0_i32 : i32, i32
  }
  func.func @transform_4(%arg0: i32, %arg1: i32) -> (i32, i32) {
    %c0_i32 = arith.constant 0 : i32
    %c0_i32_0 = arith.constant 0 : i32
    return %arg0, %c0_i32 : i32, i32
  }
  func.func @transform_5(%arg0: i32, %arg1: i32) -> (i32, i32) {
    %c0_i32 = arith.constant 0 : i32
    %c0_i32_0 = arith.constant 0 : i32
    return %arg0, %c0_i32 : i32, i32
  }
  func.func @transform_6(%arg0: i32, %arg1: i32) -> (i32, i32) {
    %c0_i32 = arith.constant 0 : i32
    %c0_i32_0 = arith.constant 0 : i32
    return %arg0, %c0_i32 : i32, i32
  }
}

</mosaic_0001>

<bundles_post_ra>
// kernel: tpu_custom_call.1
= control target key start
LH: loop header
LB: loop body
LE: loop exit
PB: predicated region body
PF: predicated region fallthrough
CT: control target
= control target key end

     0   :  { %11 = vsyncpa [#allocation4], 0  ;;  %s1576_s0 = inlined_call_operand.hbm [shape: bf16[8,1024], index: 0, kind: input, shape index: {}]   ;;  %s1577_s1 = inlined_call_operand.hbm [shape: bf16[1024,128], index: 1, kind: input, shape index: {}]   ;;  %s1578_s2 = inlined_call_operand.vmem [shape: f32[1,128], index: 2, kind: input, shape index: {}]   ;;  %s1579_s3 = inlined_call_operand.vmem [shape: f32[8,128], index: 3, kind: input, shape index: {}]   ;;  %s1580_s4 = inlined_call_operand.vmem [shape: f32[8,1], index: 4, kind: input, shape index: {}]   ;;  %s1581_s5 = inlined_call_operand.vmem [shape: s32[8,1], index: 5, kind: input, shape index: {}]   ;;  %s1582_s6 = inlined_call_operand.hbm [shape: f32[8,128], index: 6, kind: output, shape index: {}]  }
   0x1   :  { %13 = vsyncpa [#allocation4 + $0x1], 0 }
   0x2   :  { %14 = vsyncpa [#allocation7], 0 }
   0x3   :  { %16 = vsyncpa [#allocation7 + $0x1], 0 }
   0x4   :  { %17 = vsyncpa [#allocation5], 0  ;;  %s1325_s21 = smov 0   ;;  %s1327_s22 = smov 0  }
   0x5   :  { %s1329_s23 = smov 0   ;;  %s1331_s24 = smov 0  }
   0x6   :  { %s1333_s25 = smov 0   ;;  %s1335_s26 = smov 0  }
   0x7 LB: > { %s919_s27 = sadd.s32 4294967295, %s1280_s26   ;;  %s32_s28 = sadd.s32 1, %s1276_s25  ;;  %s1280_s26 = sphi %s1335_s26, %s23_s26   ;;  %s1276_s25 = sphi %s1333_s25, %s1596_s25   ;;  %s1272_s24 = sphi %s1331_s24, %s1595_s24   ;;  %s1268_s23 = sphi %s1329_s23, %s1594_s23   ;;  %s1264_s22 = sphi %s1327_s22, %s1593_s22   ;;  %s1260_s21 = sphi %s1325_s21, %s1592_s21  }
   0x8   : > { %p33_p0 = scmp.ge.s32.totalorder %s32_s28, 2  ;;  %s44_s29 = sadd.s32 1, %s1268_s23 }
   0x9   : > { %p51_p1 = scmp.ne.s32.totalorder %s1268_s23, %s1264_s22  ;;  %p52_p2 = scmp.eq.s32.totalorder %s1280_s26, 0 }
   0xa   : > { %s1598_s28 = smov (%p33_p0, %s32_s28), 0  ;;  %p57_p4 = scmp.ne.s32.totalorder %s1264_s22, %s1260_s21 }
   0xb   : > { %p1361_p3 = por %p52_p2, %p51_p1  ;;  %s40_s7 = ssub.s32 %s1276_s25, %s1598_s28 }
   0xc   : > { %p58_p5 = scmp.eq.s32.totalorder %s919_s27, 0  ;;  %p42_p6 = scmp.eq.s32.totalorder %s40_s7, 0 }
   0xd   : > { %p1041_p8 = scmp.lt.s32.totalorder %s1280_s26, 2  ;;  %s1379_s10 = sand.u32 1, %s1268_s23  }
   0xe   : > { %p1370_p7 = por %p58_p5, %p57_p4  ;;  %s979_s11 = sshll.u32 %s1276_s25, 8 }
   0xf   : > { %s1376_s9 = scalar_select %p42_p6, %s1268_s23, %s44_s29  }
  0x10   : > { %s1585_s8 = scalar_select %p1370_p7, 1, 0 }
  0x11   : > { %s925_s12 = sshll.u32 %s1379_s10, 4  ;;  %s1386_s15 = scalar_lea.hbm %s1576_s0, %s979_s11 }
  0x12   : > { %s260_s16 = scalar_lea.vmem [#allocation3], %s925_s12  ;;  %p1390_p9 = pnand %p1041_p8, %p1361_p3 }
  0x13   : > { %s270_s17 = sshll.u32 %s260_s16, 4  ;;  %s257_s19 = scalar_lea.sflag [#allocation4], %s1379_s10  ;;  %s1394_s17 = int_to_ptr.vmem [resolvable:$true] %s270_s17 }
  0x14   : > { %s1136_s20 = scalar_lea.hbm %s1386_s15, 256  ;;  %p1138_p13 = pneg %p1390_p9 }
  0x15   : > { %p1137_p12 = scmp.ne.s32.totalorder %s1386_s15, %s1136_s20  ;;  %s1141_s30 = scalar_lea.hbm %s1576_s0, 512 }
  0x16   : > { %p1142_p2 = scmp.lt.u32.totalorder %s1386_s15, %s1576_s0  ;;  %p1143_p3 = scmp.lt.u32.totalorder %s1141_s30, %s1136_s20 }
  0x17   : > { %p1139_p0 = pnand %p1138_p13, %p1137_p12  ;;  %p1145_p5 = scmp.lt.u32.totalorder %s1136_s20, %s1386_s15 }
  0x18   : > { %p1144_p4 = por %p1143_p3, %p1142_p2 }
  0x19   : > { %p1140_p1 = pneg %p1139_p0 }
  0x1a   : > { %p1146_p6 = por %p1145_p5, %p1144_p4 }
  0x1c   : > { %p1147_p8 = pnand %p1146_p6, %p1140_p1 }
  0x1e   : > { %1150 = shalt.err (!%p1147_p8)
}
  0x1f   : > { %s1151_s12 = scalar_lea.vmem %s1394_s17, 256  ;;  %s1282_s13 = smov [#allocation3]  }
  0x20   : > { %p1152_p12 = scmp.ne.s32.totalorder %s1394_s17, %s1151_s12  ;;  %s1156_s14 = sshll.u32 %s1282_s13, 4  ;;  %s1157_s14 = int_to_ptr.vmem [resolvable:$false] %s1156_s14 }
  0x21   : > { %s1158_s16 = scalar_lea.vmem %s1157_s14, 512  ;;  %p1159_p11 = scmp.lt.s32.totalorder %s1394_s17, %s1157_s14 }
  0x22   : > { %p1154_p0 = pnand %p1152_p12, %p1138_p13  ;;  %p1160_p2 = scmp.lt.s32.totalorder %s1158_s16, %s1151_s12 }
  0x24   : > { %p1155_p10 = pneg %p1154_p0  ;;  %p1161_p3 = por %p1160_p2, %p1159_p11 }
  0x26   : > { %p1162_p4 = pnand %p1161_p3, %p1155_p10 }
  0x28   : > { %1165 = shalt.err (!%p1162_p4)
}
  0x29   : > { %1037 = dma.hbm_to_vmem [thread:$0]  (!%p1390_p9), %s1386_s15, 256, %s1394_s17, %s257_s19  }
  0x2a   : > { %p1587_p1 = scmp.lt.s32.totalorder %s1280_s26, 3  ;;  %p1588_p5 = scmp.ge.s32.totalorder %s1280_s26, 1 }
  0x2b   : > { %s928_s21 = sshll.u32 %s1379_s10, 8  ;;  %s980_s29 = sshll.u32 %s1276_s25, 12 }
  0x2c   : > { %p1428_p6 = pnand %p1588_p5, %p1587_p1  ;;  %s1437_s11 = scalar_lea.hbm %s1577_s1, %s980_s29 }
  0x2d   : > { %s281_s12 = scalar_lea.vmem [#allocation6], %s928_s21  ;;  %s278_s15 = scalar_lea.sflag [#allocation7], %s1379_s10 }
  0x2e   : > { %s288_s13 = sshll.u32 %s281_s12, 4  ;;  %s1166_s17 = scalar_lea.hbm %s1437_s11, 4096  ;;  %s1439_s13 = int_to_ptr.vmem [resolvable:$true] %s288_s13 }
  0x2f   : > { %p1167_p10 = scmp.ne.s32.totalorder %s1437_s11, %s1166_s17  ;;  %s1171_s16 = scalar_lea.hbm %s1577_s1, 8192 }
  0x30   : > { %p1172_p12 = scmp.lt.u32.totalorder %s1437_s11, %s1577_s1  ;;  %p1173_p0 = scmp.lt.u32.totalorder %s1171_s16, %s1166_s17 }
  0x31   : > { %p1169_p11 = pnand %p1167_p10, %p1138_p13  ;;  %p1175_p3 = scmp.lt.u32.totalorder %s1166_s17, %s1437_s11 }
  0x32   : > { %p1174_p2 = por %p1173_p0, %p1172_p12 }
  0x33   : > { %p1170_p8 = pneg %p1169_p11 }
  0x34   : > { %p1176_p4 = por %p1175_p3, %p1174_p2 }
  0x36   : > { %p1177_p1 = pnand %p1176_p4, %p1170_p8 }
  0x38   : > { %1180 = shalt.err (!%p1177_p1)
}
  0x39   : > { %s1181_s21 = scalar_lea.vmem %s1439_s13, 4096  ;;  %s1283_s7 = smov [#allocation6]  }
  0x3a   : > { %p1182_p5 = scmp.ne.s32.totalorder %s1439_s13, %s1181_s21  ;;  %s1186_s12 = sshll.u32 %s1283_s7, 4  ;;  %s1187_s12 = int_to_ptr.vmem [resolvable:$false] %s1186_s12 }
  0x3b   : > { %s1188_s19 = scalar_lea.vmem %s1187_s12, 8192  ;;  %p1189_p7 = scmp.lt.s32.totalorder %s1439_s13, %s1187_s12 }
  0x3c   : > { %p1184_p10 = pnand %p1182_p5, %p1138_p13  ;;  %p1190_p12 = scmp.lt.s32.totalorder %s1188_s19, %s1181_s21 }
  0x3e   : > { %p1185_p11 = pneg %p1184_p10  ;;  %p1191_p0 = por %p1190_p12, %p1189_p7 }
  0x40   : > { %p1192_p2 = pnand %p1191_p0, %p1185_p11 }
  0x42   : > { %1195 = shalt.err (!%p1192_p2)
}
  0x43   : > { %s1284_s17 = smov 64   ;;  %s1285_s14 = smov 4  }
  0x44   : > { %1040 = dma.hbm_to_vmem [thread:$0]  (!%p1390_p9), %s1437_s11, 4096, %s1439_s13, %s278_s15, %s1284_s17, %s1284_s17, %s1285_s14  }
  0x45   : > { %300 = sbr.rel (%p1428_p6) target bundleno = 673 (0x2a1), region = 44  ;;  %s302_s16 = sand.u32 (!%p1428_p6), 1, %s1264_s22  }
  0x46   : > { %s932_s29 = sshll.u32 (!%p1428_p6), %s302_s16, 4  ;;  %s303_s30 = scalar_lea.sflag (!%p1428_p6), [#allocation4], %s302_s16 }
  0x47   : > { %s1470_s21 = scalar_lea.vmem (!%p1428_p6), [#allocation3], %s932_s29  ;;  %p1590_p7 = scmp.ne.s32.totalorder (!%p1428_p6), %s1585_s8, 0 }
  0x4c   : > { %1247 = dma.done.wait (%p1590_p7), %s303_s30, 256  }
  0x4d   : > { %1249 = vsyncadd (%p1590_p7), %s303_s30, 4294967040  ;;  %s933_s7 = sshll.u32 %s302_s16, 8  ;;  %s312_s18 = scalar_lea.sflag [#allocation7], %s302_s16 }
  0x4e   : > { %s1476_s10 = scalar_lea.vmem [#allocation6], %s933_s7 }
  0x4f   : > { %1251 = dma.done.wait (%p1590_p7), %s312_s18, 4096  }
  0x50   : > { %1253 = vsyncadd (%p1590_p7), %s312_s18, 4294963200  ;;  %p934_p9 = scmp.ne.s32.totalorder %s1272_s24, 0 }
  0x51   : > { %v1286_v0 = vmov (!%p934_p9), 0.0  }
  0x52   : > { %374 = sbr.rel (%p934_p9) target bundleno = 89 (0x59), region = 56  ;;  %375 = vst [vmem:[#allocation2] sm:$0xff] (!%p934_p9), %v1286_v0 }
  0x59 PF: > { %v1098_v1 = vld [vmem:[%s1476_s10 + $0x40] sm:$0xff]   ;;  %v1102_v5 = vld [vmem:[%s1476_s10 + $0x48] sm:$0xff]   ;;  %v1106_v9 = vld [vmem:[%s1476_s10 + $0x50] sm:$0xff]   ;;  %p971_p13 = scmp.ne.s32.totalorder %s1272_s24, 1 }
  0x5a   : > { %v1099_v2 = vld [vmem:[%s1476_s10 + $0xc0] sm:$0xff]   ;;  %981 = vmatprep.subr.bf16.mxu0 %v1098_v1  ;;  %v1103_v6 = vld [vmem:[%s1476_s10 + $0xc8] sm:$0xff]   ;;  %v1107_v10 = vld [vmem:[%s1476_s10 + $0xd0] sm:$0xff]   ;;  %v747_v55 = vlaneseq (!%p971_p13)  ;;  %v1287_v63 = vmov (!%p971_p13), 0  }
  0x5b   : > { %v1100_v3 = vld [vmem:[%s1476_s10] sm:$0xff]   ;;  %1003 = vmatprep.subr.bf16.mxu1 %v1099_v2  ;;  %v1104_v7 = vld [vmem:[%s1476_s10 + $0x8] sm:$0xff]   ;;  %v1108_v11 = vld [vmem:[%s1476_s10 + $0x10] sm:$0xff]   ;;  %1134 = vset.pattern.permute.xlu1 (!%p971_p13), %v1287_v63 }
  0x5c   : > { %v1101_v4 = vld [vmem:[%s1476_s10 + $0x80] sm:$0xff]   ;;  %982 = vmatpush3.bf16.msra.mxu0 %v1100_v3  ;;  %v1105_v8 = vld [vmem:[%s1476_s10 + $0x88] sm:$0xff]   ;;  %v1109_v12 = vld [vmem:[%s1476_s10 + $0x90] sm:$0xff]   ;;  %v748_v58 = vand.u32 (!%p971_p13), 127, %v747_v55  ;;  %1135 = vset.pattern.permute.xlu0 (!%p971_p13), %v1287_v63 }
  0x5d   : > { %1004 = vmatpush3.bf16.msra.mxu1 %v1101_v4  ;;  %983 = vmatprep.subr.bf16.mxu0 %v1102_v5  ;;  %v1110_v13 = vld [vmem:[%s1476_s10 + $0x58] sm:$0xff]   ;;  %v1114_v17 = vld [vmem:[%s1476_s10 + $0x60] sm:$0xff]   ;;  %v1118_v21 = vld [vmem:[%s1476_s10 + $0x68] sm:$0xff]  }
  0x5e   : > { %1005 = vmatprep.subr.bf16.mxu1 %v1103_v6  ;;  %v1111_v14 = vld [vmem:[%s1476_s10 + $0xd8] sm:$0xff]   ;;  %v1115_v18 = vld [vmem:[%s1476_s10 + $0xe0] sm:$0xff]   ;;  %v1119_v22 = vld [vmem:[%s1476_s10 + $0xe8] sm:$0xff]   ;;  %vm749_vm0 = vcmp.lt.s32.totalorder (!%p971_p13), %v748_v58, 10  ;;  %v751_v1 = vcvt.s32.f32 (!%p971_p13), %v748_v58 }
  0x5f   : > { %v1112_v15 = vld [vmem:[%s1476_s10 + $0x18] sm:$0xff]   ;;  %v1116_v19 = vld [vmem:[%s1476_s10 + $0x20] sm:$0xff]   ;;  %v1120_v23 = vld [vmem:[%s1476_s10 + $0x28] sm:$0xff]  }
  0x60   : > { %984 = vmatpush3.bf16.msra.mxu0 %v1104_v7  ;;  %v1113_v16 = vld [vmem:[%s1476_s10 + $0x98] sm:$0xff]   ;;  %v1117_v20 = vld [vmem:[%s1476_s10 + $0xa0] sm:$0xff]   ;;  %v1121_v24 = vld [vmem:[%s1476_s10 + $0xa8] sm:$0xff]   ;;  %v1288_v7 = vmov (!%p971_p13), 0.0  }
  0x61   : > { %1006 = vmatpush3.bf16.msra.mxu1 %v1105_v8  ;;  %985 = vmatprep.subr.bf16.mxu0 %v1106_v9  ;;  %v1122_v25 = vld [vmem:[%s1476_s10 + $0x70] sm:$0xff]   ;;  %v1126_v29 = vld [vmem:[%s1476_s10 + $0x78] sm:$0xff]  }
  0x62   : > { %1007 = vmatprep.subr.bf16.mxu1 %v1107_v10  ;;  %v1123_v26 = vld [vmem:[%s1476_s10 + $0xf0] sm:$0xff]   ;;  %v1127_v30 = vld [vmem:[%s1476_s10 + $0xf8] sm:$0xff]  }
  0x63   : > { %v1124_v27 = vld [vmem:[%s1476_s10 + $0x30] sm:$0xff]   ;;  %v1128_v31 = vld [vmem:[%s1476_s10 + $0x38] sm:$0xff]  }
  0x64   : > { %986 = vmatpush3.bf16.msra.mxu0 %v1108_v11  ;;  %v1125_v28 = vld [vmem:[%s1476_s10 + $0xb0] sm:$0xff]   ;;  %v1129_v32 = vld [vmem:[%s1476_s10 + $0xb8] sm:$0xff]  }
  0x65   : > { %1008 = vmatpush3.bf16.msra.mxu1 %v1109_v12  ;;  %987 = vmatprep.subr.bf16.mxu0 %v1110_v13  ;;  %v377_v33 = vld [vmem:[%s1470_s21] sm:$0xff]  ;;  %v378_v34 = vld [vmem:[%s1470_s21 + $0x8] sm:$0xff] }
  0x66   : > { %1009 = vmatprep.subr.bf16.mxu1 %v1111_v14  ;;  %v935_v35 = vcombine.low %v377_v33, %v377_v33  ;;  %v936_v36 = vcombine.high %v377_v33, %v377_v33  ;;  %v937_v37 = vcombine.low %v378_v34, %v378_v34  ;;  %v938_v38 = vcombine.high %v378_v34, %v378_v34  ;;  %v376_v47 = vld [vmem:[#allocation2] sm:$0xff] }
  0x67   : > { %v972_v53 = vld [vmem:[%s1578_s2] ss:$0 sm:$0xff] (!%p971_p13) }
  0x68   : > { %988 = vmatpush3.bf16.msra.mxu0 %v1112_v15  ;;  %681 = vmatprep.mubr.bf16.mxu0 %v936_v36  ;;  %v744_v54 = vld [vmem:[%s1579_s3] sm:$0xff] (!%p971_p13) }
  0x69   : > { %1010 = vmatpush3.bf16.msra.mxu1 %v1113_v16  ;;  %989 = vmatprep.subr.bf16.mxu0 %v1114_v17  ;;  %v745_v57 = vmul.f32 (!%p971_p13), 0.1, %v744_v54  ;;  %v761_v61 = vld [vmem:[%s1581_s5] sm:$0xff] (!%p971_p13) }
  0x6a   : > { %1011 = vmatprep.subr.bf16.mxu1 %v1115_v18  ;;  %721 = vmatprep.mubr.bf16.mxu1 %v938_v38  ;;  %v768_v62 = vld [vmem:[%s1580_s4] sm:$0xff] (!%p971_p13) }
  0x6b   : > { %vm769_vm1 = vcmp.lt.f32.partialorder (!%p971_p13), %v768_v62, 0.05  ;;  %763 = vperm.xlu1 (!%p971_p13), %1134, %v761_v61  }
  0x6c   : > { %990 = vmatpush3.bf16.msra.mxu0 %v1116_v19  ;;  %v770_v0 = vsel (!%p971_p13), %vm769_vm1, 1, %v1287_v63 }
  0x6d   : > { %1012 = vmatpush3.bf16.msra.mxu1 %v1117_v20  ;;  %991 = vmatprep.subr.bf16.mxu0 %v1118_v21 }
  0x6e   : > { %1013 = vmatprep.subr.bf16.mxu1 %v1119_v22 }
  0x6f   : > { %772 = vperm.xlu1 (!%p971_p13), %1134, %v770_v0  }
  0x70   : > { %992 = vmatpush3.bf16.msra.mxu0 %v1120_v23 }
  0x71   : > { %1014 = vmatpush3.bf16.msra.mxu1 %v1121_v24  ;;  %993 = vmatprep.subr.bf16.mxu0 %v1122_v25 }
  0x72   : > { %1015 = vmatprep.subr.bf16.mxu1 %v1123_v26 }
  0x74   : > { %994 = vmatpush3.bf16.msra.mxu0 %v1124_v27 }
  0x75   : > { %1016 = vmatpush3.bf16.msra.mxu1 %v1125_v28  ;;  %995 = vmatprep.subr.bf16.mxu0 %v1126_v29 }
  0x76   : > { %1017 = vmatprep.subr.bf16.mxu1 %v1127_v30 }
  0x78   : > { %996 = vmatpush3.bf16.msra.mxu0 %v1128_v31 }
  0x79   : > { %1018 = vmatpush3.bf16.msra.mxu1 %v1129_v32 }
  0x7b   : > { %682 = vmatmul.mubr.bf16.vlgmr.msra.gmra.mrb[0].mxu0 %v935_v35 }
  0x7c   : > { %722 = vmatmul.mubr.bf16.vlgmr.msra.gmra.mrb[0].mxu1 %v937_v37 }
  0xea   : > { %v764_v4 = vpop.permute.xlu1 (!%p971_p13), %763 }
  0xeb   : > { %vm765_vm3 = vcmp.eq.s32.totalorder (!%p971_p13), %v748_v58, %v764_v4 }
  0xec   : > { %v974_v8 = vsel (!%p971_p13), %vm765_vm3, 1.0, %v1288_v7 }
  0xee   : > { %v773_v5 = vpop.permute.xlu1 (!%p971_p13), %772 }
  0xef   : > { %vm774_vm5 = vcmp.eq.s32.totalorder (!%p971_p13), %v773_v5, 1 }
 0x14e   : > { %v997_v39 = vpop.f32.mrb[0].mxu0 }
 0x14f   : > { %v1019_v40 = vpop.f32.mrb[0].mxu1  ;;  %v998_v41 = vpop.f32.mrb[1].mxu0 }
 0x150   : > { %v1020_v42 = vpop.f32.mrb[1].mxu1  ;;  %v999_v43 = vadd.f32 %v998_v41, %v997_v39  ;;  %v1000_v45 = vpop.f32.mrb[2].mxu0 }
 0x151   : > { %v1021_v44 = vadd.f32 %v1020_v42, %v1019_v40  ;;  %v1022_v46 = vpop.f32.mrb[2].mxu1  ;;  %v1001_v48 = vpop.f32.mrb[3].mxu0  ;;  %734 = sbr.rel (%p971_p13) target bundleno = 648 (0x288), region = 60 }
 0x152   : > { %v1023_v49 = vpop.f32.mrb[3].mxu1 }
 0x153   : > { %v724_v50 = vadd.f32 %v1021_v44, %v999_v43 }
 0x155   : > { %v729_v51 = vadd.f32 %v724_v50, %v376_v47 }
 0x157   : > { %730 = vst [vmem:[#allocation2] sm:$0xff] %v729_v51 }
 0x15e   : > { %v735_v52 = vld [vmem:[#allocation2] sm:$0xff] }
 0x15f   : > { %v743_v56 = vadd.f32 %v972_v53, %v735_v52 }
 0x161   : > { %v746_v59 = vadd.f32 %v745_v57, %v743_v56 }
 0x163   : > { %v750_v60 = vsel %vm749_vm0, %v746_v59, -1e+30 }
 0x164   : > { %752 = vmax.xlane.f32.xlu0 %v750_v60 }
 0x1f1   : > { %v753_v2 = vpop.xlane.xlu0 %752 }
 0x1f2   : > { %vm754_vm2 = vcmp.eq.f32.partialorder %v750_v60, %v753_v2 }
 0x1f3   : > { %v755_v3 = vsel %vm754_vm2, %v751_v1, 128.0 }
 0x1f4   : > { %756 = vmin.xlane.f32.xlu0 %v755_v3 }
 0x281   : > { %v757_v6 = vpop.xlane.xlu0 %756 }
 0x282   : > { %vm758_vm4 = vcmp.eq.f32.partialorder %v751_v1, %v757_v6 }
 0x283   : > { %v973_v9 = vsel %vm758_vm4, 1.0, %v1288_v7 }
 0x284   : > { %v775_v10 = vsel %vm774_vm5, %v974_v8, %v973_v9 }
 0x285   : > { %v1025_v11 = vround.rtne.f32 %v775_v10 }
 0x287   : > { %777 = vst [vmem:[#allocation8] sm:$0xff] %v1025_v11 }
 0x288 PF: > { %p1532_p6 = scmp.eq.s32.totalorder %s919_s27, 1  ;;  %s1289_s14 = smov [#allocation8]  }
 0x289   : > { %s787_s16 = sshll.u32 %s1289_s14, 4  ;;  %s788_s16 = int_to_ptr.vmem [resolvable:$true] %s787_s16 }
 0x28a   : > { %s1196_s29 = scalar_lea.vmem %s788_s16, 128  ;;  %p1203_p1 = scmp.lt.s32.totalorder %s788_s16, %s788_s16 }
 0x28b   : > { %p1197_p8 = scmp.ne.s32.totalorder %s788_s16, %s1196_s29  ;;  %p1204_p5 = scmp.lt.s32.totalorder %s1196_s29, %s1196_s29 }
 0x28d   : > { %p1198_p3 = pnand %p1197_p8, %p1532_p6  ;;  %p1205_p10 = por %p1204_p5, %p1203_p1 }
 0x28f   : > { %p1199_p4 = pneg %p1198_p3 }
 0x291   : > { %p1206_p11 = pnand %p1205_p10, %p1199_p4 }
 0x293   : > { %1209 = shalt.err (!%p1206_p11)
}
 0x294   : > { %s1210_s27 = scalar_lea.hbm %s1582_s6, 128 }
 0x295   : > { %p1211_p12 = scmp.ne.s32.totalorder %s1582_s6, %s1210_s27  ;;  %p1216_p7 = scmp.lt.u32.totalorder %s1210_s27, %s1582_s6 }
 0x297   : > { %p1212_p0 = pnand %p1211_p12, %p1532_p6 }
 0x299   : > { %p1213_p2 = pneg %p1212_p0 }
 0x29b   : > { %p1218_p9 = pnand %p1216_p7, %p1213_p2 }
 0x29d   : > { %1221 = shalt.err (!%p1218_p9)
}
 0x29e   : > { %1031 = dma.vmem_to_hbm [thread:$0]  (%p1532_p6), %s788_s16, 128, %s1582_s6, [#allocation5]  }
 0x29f   : > { %1255 = dma.done.wait (%p1532_p6), [#allocation5], 128  }
 0x2a0   : > { %1257 = vsyncadd (%p1532_p6), [#allocation5], 4294967168 }
 0x2a1 PF: > { %s23_s26 = sadd.s32 1, %s1280_s26   ;;  %s1592_s21 = smov %s1264_s22 }
 0x2a2   : > { %p20_p13 = scmp.ge.s32.totalorder %s23_s26, 4   ;;  %s1593_s22 = smov %s1268_s23 }
 0x2a3   : > { %s1594_s23 = smov %s1376_s9  ;;  %s1595_s24 = smov %s1276_s25 }
 0x2a4   : > { %s1596_s25 = smov %s1598_s28  ;;  %22 = sbr.rel (!%p20_p13) target bundleno = 7 (0x7), region = 112 }
 0x2ab   :  { %800 = vsyncpa [#allocation4], 1 }
 0x2ac   :  { %802 = vsyncpa [#allocation4 + $0x1], 1 }
 0x2ad   :  { %803 = vsyncpa [#allocation7], 1 }
 0x2ae   :  { %805 = vsyncpa [#allocation7 + $0x1], 1 }
 0x2af   :  { %806 = vsyncpa [#allocation5], 1 }
 0x2b0   :  { %808 = vsyncpa [#allocation5 + $0x1], 1 }

</bundles_post_ra>
